<compile_context>
chip_gen: v6e
topology: v6e:2x2x1
jax: 0.10.0
libtpu: 0.0.40
codegen_flags: <defaults>
</compile_context>

<pallas_src>
import functools

import jax
import jax.numpy as jnp
from jax.experimental import pallas as pl
from jax.experimental.pallas import tpu as pltpu


# --------------------------------------------------------------------------
# Patch embedding: Conv2d(kernel=stride=patch) == matmul over flattened patches
# --------------------------------------------------------------------------
def _patch_embed_kernel(p_ref, w_ref, b_ref, o_ref):
    # p: (tile, C*P*P) bf16, w: (C*P*P, E) bf16, b: (1, E) f32 -> o: (tile, E) f32
    o_ref[...] = (
        jnp.dot(p_ref[...], w_ref[...], preferred_element_type=jnp.float32)
        + b_ref[...]
    )


def _choose_row_tile(n_rows, max_tile=256):
    """Largest row tile <= max_tile that divides n_rows and is a multiple of 8."""
    if n_rows <= max_tile:
        return n_rows
    best = None
    for t in range(8, max_tile + 1, 8):
        if n_rows % t == 0:
            best = t
    return best if best is not None else n_rows


def patch_embed(patches, w_flat, b):
    BP, Dp = patches.shape
    E = w_flat.shape[1]
    tile = _choose_row_tile(BP)
    return pl.pallas_call(
        _patch_embed_kernel,
        grid=(BP // tile,),
        in_specs=[
            pl.BlockSpec((tile, Dp), lambda i: (i, 0)),   # patches: row-tiled
            pl.BlockSpec((Dp, E), lambda i: (0, 0)),      # weight: resident
            pl.BlockSpec((1, E), lambda i: (0, 0)),       # bias: resident
        ],
        out_specs=pl.BlockSpec((tile, E), lambda i: (i, 0)),
        out_shape=jax.ShapeDtypeStruct((BP, E), jnp.float32),
        compiler_params=pltpu.CompilerParams(dimension_semantics=("parallel",)),
    )(patches, w_flat, b)


# --------------------------------------------------------------------------
# Fused encoder stack: grid = (batch, depth), activations carried in VMEM
#   x = x + attn(norm1(x)); x = x + mlp(norm2(x))   (matches the reference)
# --------------------------------------------------------------------------
def _encoder_stack_kernel(x_ref, g1_ref, b1_ref, qkvw_ref, qkvb_ref,
                          ow_ref, ob_ref, g2_ref, b2_ref,
                          w1_ref, mb1_ref, w2_ref, mb2_ref,
                          o_ref, carry_ref, *, num_heads):
    d = pl.program_id(1)

    @pl.when(d == 0)
    def _():
        carry_ref[...] = x_ref[...]          # load this batch element's tokens

    x = carry_ref[...]                        # (N, C) f32
    N, C = x.shape
    H = num_heads
    Hd = C // H

    def layernorm(h, g, b):                   # f32 (VPU/EUP path stays f32)
        mu = jnp.mean(h, axis=-1, keepdims=True)
        var = jnp.mean(jnp.square(h - mu), axis=-1, keepdims=True)
        return (h - mu) * jax.lax.rsqrt(var + 1e-5) * g + b

    def mm(a_f32, w_ref_, b_ref_):            # bf16 MXU inputs, f32 accumulate
        return (jnp.dot(a_f32.astype(jnp.bfloat16), w_ref_[...],
                        preferred_element_type=jnp.float32) + b_ref_[...])

    # ---- attention branch ----
    h = layernorm(x, g1_ref[...], b1_ref[...])
    qkv = mm(h, qkvw_ref, qkvb_ref)           # (N, 3C) f32

    # Head-major stacks (H, N, Hd): one batched score matmul + one batched
    # context matmul per layer instead of 2*H tiny per-head matmuls.
    q3 = jnp.stack([qkv[:, i * Hd:(i + 1) * Hd] for i in range(H)],
                   axis=0).astype(jnp.bfloat16)
    k3 = jnp.stack([qkv[:, C + i * Hd:C + (i + 1) * Hd] for i in range(H)],
                   axis=0).astype(jnp.bfloat16)
    v3 = jnp.stack([qkv[:, 2 * C + i * Hd:2 * C + (i + 1) * Hd] for i in range(H)],
                   axis=0).astype(jnp.bfloat16)

    s = jnp.einsum('hnd,hmd->hnm', q3, k3,
                   preferred_element_type=jnp.float32) * (1.0 / (Hd ** 0.5))
    s = s - jnp.max(s, axis=-1, keepdims=True)
    p = jnp.exp(s)                            # f32 softmax
    attn = p * pl.reciprocal(jnp.sum(p, axis=-1, keepdims=True), approx=True)
    ctx3 = jnp.einsum('hnm,hmd->hnd', attn.astype(jnp.bfloat16), v3,
                      preferred_element_type=jnp.float32)      # (H, N, Hd) f32
    ctx = jnp.concatenate([ctx3[i] for i in range(H)], axis=-1)  # (N, C)

    x = x + mm(ctx, ow_ref, ob_ref)

    # ---- MLP branch ----
    h = layernorm(x, g2_ref[...], b2_ref[...])
    h1 = mm(h, w1_ref, mb1_ref)
    h1 = jax.nn.gelu(h1, approximate=False)   # exact GELU (torch nn.GELU default)
    # TODO(synk): nn.Dropout(0.1) is identity in eval/inference mode; not applied.
    x = x + mm(h1, w2_ref, mb2_ref)

    carry_ref[...] = x

    @pl.when(d == pl.num_programs(1) - 1)
    def _():
        o_ref[...] = carry_ref[...]


_ENC_PARAM_ORDER = ('ln1_g', 'ln1_b', 'qkv_w', 'qkv_b', 'out_w', 'out_b',
                    'ln2_g', 'ln2_b', 'mlp_w1', 'mlp_b1', 'mlp_w2', 'mlp_b2')


def encoder_stack(tokens, enc, *, num_heads):
    B, N, C = tokens.shape
    depth = enc['qkv_w'].shape[0]

    def weight_spec(shape):
        rank = len(shape)
        return pl.BlockSpec((None,) + tuple(shape[1:]),
                            lambda b, d, _r=rank: (d,) + (0,) * (_r - 1))

    args = [tokens]
    in_specs = [pl.BlockSpec((None, N, C), lambda b, d: (b, 0, 0))]
    for name in _ENC_PARAM_ORDER:
        a = enc[name]
        args.append(a)
        in_specs.append(weight_spec(a.shape))

    return pl.pallas_call(
        functools.partial(_encoder_stack_kernel, num_heads=num_heads),
        grid=(B, depth),
        in_specs=in_specs,
        out_specs=pl.BlockSpec((None, N, C), lambda b, d: (b, 0, 0)),
        out_shape=jax.ShapeDtypeStruct((B, N, C), jnp.float32),
        scratch_shapes=[pltpu.VMEM((N, C), jnp.float32)],   # activation carry
        compiler_params=pltpu.CompilerParams(
            dimension_semantics=("parallel", "arbitrary")),
    )(*args)


# --------------------------------------------------------------------------
# Parameter construction (deterministic, synthetic) and full forward pass
# --------------------------------------------------------------------------
def init_params(key, *, img_size, patch_size, in_channels, embed_dim, depth,
                num_heads, mlp_dim):
    P = patch_size
    n_patches = (img_size // P) ** 2
    E, M, D = embed_dim, mlp_dim, depth
    k = jax.random.split(key, 12)

    conv_w = 0.02 * jax.random.normal(k[0], (E, in_channels, P, P), jnp.float32)
    params = {
        # flatten conv weight to (C*P*P, E) so patches @ w matches Conv2d;
        # matmul weights stored bf16 (f32 accumulation in-kernel)
        'patch_w': conv_w.reshape(E, in_channels * P * P).T.astype(jnp.bfloat16),
        'patch_b': 0.02 * jax.random.normal(k[1], (1, E), jnp.float32),
        'cls_token': jax.random.normal(k[2], (1, 1, E), jnp.float32),
        'pos_embed': jax.random.normal(k[3], (1, n_patches + 1, E), jnp.float32),
        # LearnableMargins (m1, m2) -- parameters only, not used in forward()
        'margins': (jnp.float32(0.0), jnp.float32(0.2)),
    }
    params['enc'] = {
        'ln1_g': jnp.ones((D, 1, E), jnp.float32),
        'ln1_b': jnp.zeros((D, 1, E), jnp.float32),
        'qkv_w': (0.02 * jax.random.normal(k[4], (D, E, 3 * E),
                                           jnp.float32)).astype(jnp.bfloat16),
        'qkv_b': 0.02 * jax.random.normal(k[5], (D, 1, 3 * E), jnp.float32),
        'out_w': (0.02 * jax.random.normal(k[6], (D, E, E),
                                           jnp.float32)).astype(jnp.bfloat16),
        'out_b': 0.02 * jax.random.normal(k[7], (D, 1, E), jnp.float32),
        'ln2_g': jnp.ones((D, 1, E), jnp.float32),
        'ln2_b': jnp.zeros((D, 1, E), jnp.float32),
        'mlp_w1': (0.02 * jax.random.normal(k[8], (D, E, M),
                                            jnp.float32)).astype(jnp.bfloat16),
        'mlp_b1': 0.02 * jax.random.normal(k[9], (D, 1, M), jnp.float32),
        'mlp_w2': (0.02 * jax.random.normal(k[10], (D, M, E),
                                            jnp.float32)).astype(jnp.bfloat16),
        'mlp_b2': 0.02 * jax.random.normal(k[11], (D, 1, E), jnp.float32),
    }
    return params


def vit_forward(x_nchw, params, *, patch_size, num_heads):
    """x_nchw: (B, C, H, W) float32.  Returns (B, embed_dim) -- the CLS token."""
    B, C, Himg, Wimg = x_nchw.shape
    P = patch_size
    nh, nw = Himg // P, Wimg // P
    E = params['patch_w'].shape[1]

    # NCHW -> per-patch flattened vectors in (c, dh, dw) order (Conv2d order)
    patches = (x_nchw.reshape(B, C, nh, P, nw, P)
               .transpose(0, 2, 4, 1, 3, 5)
               .reshape(B * nh * nw, C * P * P)).astype(jnp.bfloat16)

    emb = patch_embed(patches, params['patch_w'], params['patch_b'])
    emb = emb.reshape(B, nh * nw, E)

    cls = jnp.broadcast_to(params['cls_token'], (B, 1, E))
    tokens = jnp.concatenate([cls, emb], axis=1) + params['pos_embed']

    tokens = encoder_stack(tokens, params['enc'], num_heads=num_heads)
    return tokens[:, 0]


if __name__ == "__main__":
    # Small config consistent with the module's constructor arguments.
    img_size, patch_size, in_channels = 16, 4, 4
    embed_dim, depth, num_heads, mlp_dim = 32, 2, 4, 64

    key = jax.random.PRNGKey(0)
    pkey, xkey = jax.random.split(key)
    params = init_params(pkey, img_size=img_size, patch_size=patch_size,
                         in_channels=in_channels, embed_dim=embed_dim,
                         depth=depth, num_heads=num_heads, mlp_dim=mlp_dim)

    x = jax.random.normal(xkey, (2, in_channels, img_size, img_size), jnp.float32)

    out = vit_forward(x, params, patch_size=patch_size, num_heads=num_heads)
    out = jax.block_until_ready(out)

    assert out.shape == (2, embed_dim), out.shape
    assert bool(jnp.all(jnp.isfinite(out)))
    print("KERNEL_OK")
</pallas_src>

<mosaic_0001>
module attributes {stable_mosaic.version = 11 : i64} {
  func.func @_patch_embed_kernel(%arg0: i32, %arg1: memref<32x64xbf16, #tpu.memory_space<vmem>>, %arg2: memref<64x32xbf16, #tpu.memory_space<vmem>>, %arg3: memref<1x32xf32, #tpu.memory_space<vmem>>, %arg4: memref<32x32xf32, #tpu.memory_space<vmem>>) attributes {dimension_semantics = [#tpu.dimension_semantics<parallel>], iteration_bounds = array<i64: 1>, scalar_prefetch = 0 : i64, scratch_operands = 0 : i64, tpu.core_type = #tpu.core_type<tc>, window_params = [{transform_indices = @transform_0, window_bounds = array<i64: 32, 64>}, {pipeline_mode = #tpu.pipeline_mode<synchronous>, transform_indices = @transform_1, window_bounds = array<i64: 64, 32>}, {pipeline_mode = #tpu.pipeline_mode<synchronous>, transform_indices = @transform_2, window_bounds = array<i64: 1, 32>}, {transform_indices = @transform_3, window_bounds = array<i64: 32, 32>}]} {
    %c0 = arith.constant 0 : index
    %c0_0 = arith.constant 0 : index
    %0 = vector.load %arg1[%c0, %c0_0] : memref<32x64xbf16, #tpu.memory_space<vmem>>, vector<32x64xbf16>
    %c0_1 = arith.constant 0 : index
    %c0_2 = arith.constant 0 : index
    %1 = vector.load %arg2[%c0_1, %c0_2] : memref<64x32xbf16, #tpu.memory_space<vmem>>, vector<64x32xbf16>
    %cst = arith.constant dense<0.000000e+00> : vector<32x32xf32>
    %2 = tpu.matmul %0, %1, %cst {dimension_numbers = #tpu.dot_dimension_numbers<[1], [0], [0], [1], [0, 0, 1, 1], [], []>} : vector<32x64xbf16>, vector<64x32xbf16>, vector<32x32xf32> -> vector<32x32xf32>
    %c0_3 = arith.constant 0 : index
    %c0_4 = arith.constant 0 : index
    %3 = vector.load %arg3[%c0_3, %c0_4] : memref<1x32xf32, #tpu.memory_space<vmem>>, vector<1x32xf32>
    %4 = vector.broadcast %3 : vector<1x32xf32> to vector<32x32xf32>
    %5 = arith.addf %2, %4 : vector<32x32xf32>
    %c0_5 = arith.constant 0 : index
    %c0_6 = arith.constant 0 : index
    %6 = vector.load %arg4[%c0_5, %c0_6] : memref<32x32xf32, #tpu.memory_space<vmem>>, vector<32x32xf32>
    tpu.vector_store %arg4[%c0_5, %c0_6], %5 {strides = array<i32>} : memref<32x32xf32, #tpu.memory_space<vmem>>, vector<32x32xf32>,
    return
  }
  func.func @transform_0(%arg0: i32) -> (i32, i32) {
    %c0_i32 = arith.constant 0 : i32
    %c0_i32_0 = arith.constant 0 : i32
    return %arg0, %c0_i32 : i32, i32
  }
  func.func @transform_1(%arg0: i32) -> (i32, i32) {
    %c0_i32 = arith.constant 0 : i32
    %c0_i32_0 = arith.constant 0 : i32
    %c0_i32_1 = arith.constant 0 : i32
    return %c0_i32, %c0_i32_0 : i32, i32
  }
  func.func @transform_2(%arg0: i32) -> (i32, i32) {
    %c0_i32 = arith.constant 0 : i32
    %c0_i32_0 = arith.constant 0 : i32
    %c0_i32_1 = arith.constant 0 : i32
    return %c0_i32, %c0_i32_0 : i32, i32
  }
  func.func @transform_3(%arg0: i32) -> (i32, i32) {
    %c0_i32 = arith.constant 0 : i32
    %c0_i32_0 = arith.constant 0 : i32
    return %arg0, %c0_i32 : i32, i32
  }
}

</mosaic_0001>

<bundles_post_ra>
// kernel: tpu_custom_call.1
= control target key start
LH: loop header
LB: loop body
LE: loop exit
PB: predicated region body
PF: predicated region fallthrough
CT: control target
= control target key end

     0   :  { %vm69_vm0 = vcmask 523264   ;;  %s251_s0 = inlined_call_operand.vmem [shape: bf16[32,64], index: 0, kind: input, shape index: {}]   ;;  %s252_s1 = inlined_call_operand.vmem [shape: bf16[64,32], index: 1, kind: input, shape index: {}]   ;;  %s253_s2 = inlined_call_operand.vmem [shape: f32[1,32], index: 2, kind: input, shape index: {}]   ;;  %s254_s3 = inlined_call_operand.hbm [shape: f32[32,32], index: 3, kind: output, shape index: {}]  }
   0x1   :  { %v176_v0 = vld [vmem:[%s252_s1 + $0x18] sm:$0xff]   ;;  %v177_v1 = vld [vmem:[%s252_s1 + $0x10] sm:$0xff]   ;;  %v178_v2 = vld [vmem:[%s252_s1 + $0x8] sm:$0xff]  }
   0x2   :  { %161 = vmatprep.subr.bf16.mxu0 %v176_v0  ;;  %v180_v3 = vld [vmem:[%s251_s0] sm:$0xff]  }
   0x3   :  { %162 = vmatpush3.bf16.msra.mxu0 %v176_v0  ;;  %169 = vmatprep.mubr.msk.bf16.mxu0 %vm69_vm0, %v180_v3 }
   0x4   :  { %163 = vmatprep.subr.bf16.mxu0 %v177_v1 }
   0x5   :  { %8 = vsyncpa [#allocation3], 0  ;;  %v179_v4 = vld [vmem:[%s252_s1] sm:$0xff]   ;;  %v181_v5 = vld [vmem:[%s251_s0 + $0x8] sm:$0xff]   ;;  %vm125_vm1 = vcmask 261120   ;;  %s204_s26 = smov [#allocation2]  }
   0x6   :  { %v146_v6 = vld [vmem:[%s253_s2] ss:$0 sm:$0xff]  ;;  %s135_s1 = sshll.u32 %s204_s26, 4  ;;  %s136_s1 = int_to_ptr.vmem [resolvable:$true] %s135_s1 }
   0x7   :  { %164 = vmatpush3.bf16.msra.mxu0 %v177_v1  ;;  %s182_s0 = scalar_lea.vmem %s136_s1, 512  ;;  %p187_p1 = scmp.lt.s32.totalorder %s136_s1, %s136_s1 }
   0x8   :  { %165 = vmatprep.subr.bf16.mxu0 %v178_v2  ;;  %p183_p0 = scmp.ne.s32.totalorder %s136_s1, %s182_s0  ;;  %p188_p2 = scmp.lt.s32.totalorder %s182_s0, %s182_s0 }
   0xa   :  { %p189_p3 = por %p188_p2, %p187_p1 }
   0xb   :  { %166 = vmatpush3.bf16.msra.mxu0 %v178_v2 }
   0xc   :  { %167 = vmatprep.subr.bf16.mxu0 %v179_v4  ;;  %p190_p4 = pnand %p189_p3, %p183_p0 }
   0xf   :  { %168 = vmatpush3.bf16.msra.mxu0 %v179_v4 }
  0x12   :  { %170 = vmatmul.mubr.msk.bf16.vlgmr.msra.gmra.mxu0 %vm69_vm0, %v181_v5 }
  0xd2   :  { %v171_v7 = vpop.f32.mrf.mxu0 }
  0xd3   :  { %v119_v8 = vadd.f32 %v171_v7, %v146_v6 }
  0xd4   :  { %v110_v9 = vpop.f32.mrf.mxu0 }
  0xd5   :  { %128 = vst.msk [vmem:[#allocation2 + $0x10] sm:$0xff] %vm125_vm1, %v119_v8  ;;  %v111_v10 = vadd.f32 %v146_v6, %v110_v9 }
  0xd6   :  { %v172_v11 = vpop.f32.mrf.mxu0 }
  0xd7   :  { %126 = vst.msk [vmem:[#allocation2] sm:$0xff] %vm125_vm1, %v111_v10  ;;  %v122_v12 = vadd.f32 %v172_v11, %v146_v6 }
  0xd8   :  { %v113_v13 = vpop.f32.mrf.mxu0 }
  0xd9   :  { %129 = vst.msk [vmem:[#allocation2 + $0x18] sm:$0xff] %vm125_vm1, %v122_v12  ;;  %v114_v14 = vadd.f32 %v146_v6, %v113_v13 }
  0xdb   :  { %127 = vst.msk [vmem:[#allocation2 + $0x8] sm:$0xff] %vm125_vm1, %v114_v14 }
  0xdc   :  { %193 = shalt.err (!%p190_p4)
}
  0xdd   :  { %s205_s2 = smov 128   ;;  %s206_s27 = smov 8  }
  0xde   :  { %141 = dma.vmem_to_hbm [thread:$0]  %s136_s1, 512, %s254_s3, [#allocation3], %s205_s2, %s205_s2, %s206_s27  }
  0xdf   :  { %202 = dma.done.wait [#allocation3], 512  }
  0xe0   :  { %203 = vsyncadd [#allocation3], 4294966784 }
  0xe1   :  { %145 = vsyncpa [#allocation3], 1 }

</bundles_post_ra>
